<compile_context>
chip_gen: v7x
topology: tpu7x:2x2x1
jax: 0.10.0
libtpu: 0.0.40
codegen_flags: <defaults>
</compile_context>

<pallas_src>
import functools
import math

import numpy as np
import jax
import jax.numpy as jnp
from jax.experimental import pallas as pl
from jax.experimental.pallas import tpu as pltpu

# ------------------------------------------------------------------ config ---
DIM = 16            # embed_dim of the Extractor
PATCH = 4           # OverlapPatchEmbed patch_size / stride
PATCH_KEYS = ("patch_1", "patch_2")
MASK_KEYS = ("mask_1", "mask_2")
FEATURE_KEYS = ("feature_1", "feature_2")
TARGET_KEYS = ("points_1",)
VARIANT = "oneline"

_VMEM_SPEC = pl.BlockSpec(memory_space=pltpu.MemorySpace.VMEM)


# ------------------------------------------------------- roll direction probe ---
_ROLL_SIGN = None


def _roll_probe_kernel(x_ref, o_ref):
    o_ref[...] = pltpu.roll(x_ref[...], 1, 1)


def _resolve_roll_sign():
    """pltpu.roll is documented to match jnp.roll; probe it once *eagerly* (outside jit) so
    the depthwise-conv lane shifts stay correct regardless of the rotation convention of the
    installed lowering.  If called under tracing without a prior eager probe, fall back to
    the documented jnp.roll-compatible convention."""
    global _ROLL_SIGN
    if _ROLL_SIGN is not None:
        return _ROLL_SIGN
    n = 256
    x = jnp.asarray(np.arange(n, dtype=np.float32).reshape(1, n))
    y = pl.pallas_call(
        _roll_probe_kernel,
        out_shape=jax.ShapeDtypeStruct((1, n), jnp.float32),
        in_specs=[_VMEM_SPEC],
        out_specs=_VMEM_SPEC,
    )(x)
    try:
        v = int(np.asarray(y)[0, 0])
    except (jax.errors.ConcretizationTypeError, jax.errors.TracerArrayConversionError):
        return 1  # being traced: assume jnp.roll convention (probe eagerly in __main__)
    _ROLL_SIGN = 1 if v == n - 1 else (-1 if v == 1 else 1)
    return _ROLL_SIGN


# ------------------------------------------------------------ fused kernel ---
def _extractor_kernel(*refs, n_blocks, H, W, eps, roll_sign):
    """Entire Extractor (+ fused heads) forward on VMEM-resident (C, N_tokens) tiles.

    Token index t = b*H*W + y*W + x (channels on sublanes, tokens dense on lanes)."""
    it = iter(refs)
    nx = lambda: next(it)  # noqa: E731

    patches_ref = nx()                                     # (Cin*P*P, NT)
    pe_w, pe_b, pe_g, pe_bb = [nx() for _ in range(4)]     # patch-embed conv + BatchNorm
    block_refs = [[nx() for _ in range(8)] for _ in range(n_blocks)]
    apw_w, apw_b, adw_w, adw_b, ac1_w, ac1_b = [nx() for _ in range(6)]
    me_w, me_b, pr_w, pr_b, hwT_ref, hbT_ref = [nx() for _ in range(6)]
    feat_out, mask_out, o_out = [nx() for _ in range(3)]

    f32 = jnp.float32
    NT = patches_ref.shape[1]

    # per-token spatial coordinates, shared by every depthwise conv
    tid = jax.lax.broadcasted_iota(jnp.int32, (1, NT), 1)

    def _coord(t, n):
        if n & (n - 1) == 0:                 # power of two -> cheap bit ops on the VPU
            s = n.bit_length() - 1
            return t & (n - 1), t >> s
        return t % n, t // n

    xpos, tq = _coord(tid, W)
    ypos, _ = _coord(tq, H)

    # zero-padding validity masks for every offset of a 7x7 window, computed ONCE and
    # reused by all depthwise convolutions in the network.
    P7 = 3
    yv = {dy: (ypos + dy >= 0) & (ypos + dy < H) for dy in range(-P7, P7 + 1)}
    xv = {dx: (xpos + dx >= 0) & (xpos + dx < W) for dx in range(-P7, P7 + 1)}
    valid = {(dy, dx): yv[dy] & xv[dx]
             for dy in range(-P7, P7 + 1) for dx in range(-P7, P7 + 1)}

    def pw(w_ref, x, b_ref):
        # 1x1 conv == (Cout, Cin) @ (Cin, NT) on the MXU
        return jnp.dot(w_ref[...], x, preferred_element_type=f32) + b_ref[...]

    def bn(x, g_ref, b_ref):
        # BatchNorm2d, training-mode batch statistics (biased variance) over all tokens
        mean = jnp.mean(x, axis=1, keepdims=True)
        var = jnp.mean(jnp.square(x - mean), axis=1, keepdims=True)
        return (x - mean) * jax.lax.rsqrt(var + eps) * g_ref[...] + b_ref[...]

    def erf(z):
        # Abramowitz & Stegun 7.1.26 (|err| < 1.5e-7): exact-erf GELU without relying on an
        # erf lowering in Mosaic (only exp / div / where are used; exp goes to the EUP).
        a1, a2, a3, a4, a5 = 0.254829592, -0.284496736, 1.421413741, -1.453152027, 1.061405429
        p = 0.3275911
        az = jnp.abs(z)
        t = 1.0 / (1.0 + p * az)
        poly = ((((a5 * t + a4) * t + a3) * t + a2) * t + a1) * t
        e = 1.0 - poly * jnp.exp(-az * az)
        return jnp.where(z >= 0, e, -e)

    def gelu(x):  # torch nn.GELU() default == exact-erf variant
        return 0.5 * x * (1.0 + erf(x * 0.7071067811865476))

    def dwconv(x, w_ref, b_ref, k):
        # depthwise k x k conv, stride 1, 'same' zero padding: lane rolls + validity masks
        pad = k // 2
        acc = jnp.zeros(x.shape, f32)
        for ky in range(k):
            dy = ky - pad
            for kx in range(k):
                dx = kx - pad
                off = dy * W + dx
                if off == 0:
                    shifted = x
                else:
                    shifted = jnp.where(valid[(dy, dx)],
                                        pltpu.roll(x, (-roll_sign * off) % NT, 1), 0.0)
                acc = acc + shifted * w_ref[ky, kx]       # (16,1) per-tap weight broadcast
        return acc + b_ref[...]

    # --- OverlapPatchEmbed: 4x4 / stride-4 conv (as matmul) + BatchNorm2d ---
    out = bn(pw(pe_w, patches_ref[...], pe_b), pe_g, pe_bb)

    # --- ConvNeXt blocks: dw7x7 -> BN -> 1x1(x4) -> GELU -> 1x1 -> residual ---
    for dw_w, dw_b, g, b, w1, b1, w2, b2 in block_refs:
        h = bn(dwconv(out, dw_w, dw_b, 7), g, b)
        h = gelu(pw(w1, h, b1))
        out = out + pw(w2, h, b2)                          # drop_path == Identity

    # --- Attnblock (fix_mask=False, normalization_strength=-1 -> no mask normalisation) ---
    # conv0(3x3 dw) + conv_spatial(7x7 dw) on the same input were folded by the wrapper
    # into a single 7x7 depthwise conv (adw_w / adw_b).
    a = pw(apw_w, out, apw_b)
    attn = pw(ac1_w, dwconv(a, adw_w, adw_b, 7), ac1_b)

    # --- heads: feature = proj(out); mask = sigmoid(mask_extractor(attn)); fm = f*m ---
    feature = jnp.sum(out * pr_w[...], axis=0, keepdims=True) + pr_b[...]       # (1, NT)
    mask = jax.nn.sigmoid(jnp.sum(attn * me_w[...], axis=0, keepdims=True) + me_b[...])
    fm = feature * mask

    # --- fused spatial mean-pool + stream concat + stand-in 2->8 linear head ---
    # hwT_ref is the wrapper-prebuilt (B*8, NT) matrix folding pooling and the linear layer.
    o = jnp.sum(hwT_ref[...] * fm, axis=1, keepdims=True) + hbT_ref[...]        # (B*8, 1)

    feat_out[...] = feature.astype(feat_out.dtype)
    mask_out[...] = mask.astype(mask_out.dtype)
    o_out[...] = o.astype(o_out.dtype)


# ---------------------------------------------------------------- wrappers ---
def extractor_fused(params, patches_t, hwT, hbT, Hp, Wp):
    """One pallas_call for the whole extractor + heads.  Returns (feature, mask, points_col)."""
    NT = patches_t.shape[1]
    BNo = hbT.shape[0]

    # Fold the Attnblock's 3x3 + 7x7 depthwise convs (same input, results summed) into one
    # 7x7 depthwise conv: conv(a, w0) + conv(a, ws) == conv(a, pad(w0) + ws); biases add.
    c0_full = jnp.zeros_like(params["attn_cs_w"]).at[2:5, 2:5].set(params["attn_c0_w"])
    adw_w = params["attn_cs_w"] + c0_full
    adw_b = params["attn_c0_b"] + params["attn_cs_b"]

    flat = [patches_t, params["pe_w"], params["pe_b"], params["pe_gamma"], params["pe_beta"]]
    for b in params["blocks"]:
        flat += [b["dw_w"], b["dw_b"], b["bn_gamma"], b["bn_beta"],
                 b["pw1_w"], b["pw1_b"], b["pw2_w"], b["pw2_b"]]
    flat += [params["attn_pw_w"], params["attn_pw_b"], adw_w, adw_b,
             params["attn_c1_w"], params["attn_c1_b"],
             params["me_w"], params["me_b"], params["proj_w"], params["proj_b"], hwT, hbT]

    kernel = functools.partial(
        _extractor_kernel, n_blocks=len(params["blocks"]),
        H=Hp, W=Wp, eps=1e-5, roll_sign=_resolve_roll_sign())
    return pl.pallas_call(
        kernel,
        out_shape=(jax.ShapeDtypeStruct((1, NT), jnp.float32),                 # feature
                   jax.ShapeDtypeStruct((1, NT), jnp.float32),                 # mask
                   jax.ShapeDtypeStruct((BNo, 1), jnp.float32)),               # points (B*8, 1)
        in_specs=[_VMEM_SPEC] * len(flat),
        out_specs=(_VMEM_SPEC, _VMEM_SPEC, _VMEM_SPEC),
    )(*flat)


def model_forward(params, data):
    """Model.forward for variant='oneline' (data is a dict, keys as in __init__)."""
    e1, e2 = PATCH_KEYS
    inputs = jnp.concatenate([data[e1], data[e2]], axis=0)        # NCHW (2B, 1, H, W)
    B2, Cin, Hin, Win = inputs.shape
    Hp, Wp = Hin // PATCH, Win // PATCH
    S = Hp * Wp
    NT = B2 * S
    B = B2 // 2

    # layout glue: channels-first token layout (Cin*P*P, NT); token t = b*S + y*Wp + x
    patches_t = (inputs.reshape(B2, Cin, Hp, PATCH, Wp, PATCH)
                 .transpose(1, 3, 5, 0, 2, 4)
                 .reshape(Cin * PATCH * PATCH, NT))

    # Fold spatial mean-pool + stream concat + the stand-in 2->8 linear head into a single
    # (B*8, NT) matrix so the kernel finishes the points output with one lane reduction.
    head_w, head_b = params["head_w"], params["head_b"]            # (2, 8), (8,)
    No = head_w.shape[1]
    b_of_t = jnp.arange(NT) // S                                   # which image each token is in
    stream = (b_of_t >= B).astype(jnp.int32)                       # 0 = first stream, 1 = second
    row = jnp.where(b_of_t < B, b_of_t, b_of_t - B)                # output row in the pooled batch
    onehot = jax.nn.one_hot(row, B, dtype=jnp.float32)             # (NT, B)
    hw_rows = head_w[stream]                                       # (NT, No)
    hwT = ((onehot[:, :, None] * hw_rows[:, None, :]).reshape(NT, B * No) / S).T   # (B*No, NT)
    hbT = jnp.tile(head_b, B).reshape(B * No, 1)

    feat_t, mask_t, o_col = extractor_fused(params, patches_t, hwT, hbT, Hp, Wp)

    feature = feat_t.reshape(B2, 1, Hp, Wp)                        # NCHW
    mask = mask_t.reshape(B2, 1, Hp, Wp)
    o = o_col.reshape(B, 4, 2)

    out = dict(data)
    out[MASK_KEYS[0]], out[MASK_KEYS[1]] = mask[:B], mask[B:]
    out[FEATURE_KEYS[0]], out[FEATURE_KEYS[1]] = feature[:B], feature[B:]
    out[TARGET_KEYS[0]] = o
    return out


# ----------------------------------------------------------------- params ----
def _kaiming(key, shape, fan_in):
    # matches Model.init(): nn.init.kaiming_normal_ on conv weights (std = sqrt(2 / fan_in))
    return math.sqrt(2.0 / fan_in) * jax.random.normal(key, shape, jnp.float32)


def init_params(key):
    ks = iter(jax.random.split(key, 16))
    p = {
        # OverlapPatchEmbed: Conv2d(1, 16, 4, stride=4) stored as (Cout, Cin*4*4) + BN(16)
        "pe_w": _kaiming(next(ks), (DIM, PATCH * PATCH), PATCH * PATCH),
        "pe_b": jnp.zeros((DIM, 1), jnp.float32),
        "pe_gamma": jnp.ones((DIM, 1), jnp.float32),
        "pe_beta": jnp.zeros((DIM, 1), jnp.float32),
        "blocks": [],
    }
    for _ in range(2):                                             # Extractor depths = 2
        p["blocks"].append({
            "dw_w": _kaiming(next(ks), (7, 7, DIM, 1), 7 * 7),
            "dw_b": jnp.zeros((DIM, 1), jnp.float32),
            "bn_gamma": jnp.ones((DIM, 1), jnp.float32),
            "bn_beta": jnp.zeros((DIM, 1), jnp.float32),
            "pw1_w": _kaiming(next(ks), (4 * DIM, DIM), DIM),
            "pw1_b": jnp.zeros((4 * DIM, 1), jnp.float32),
            "pw2_w": _kaiming(next(ks), (DIM, 4 * DIM), 4 * DIM),
            "pw2_b": jnp.zeros((DIM, 1), jnp.float32),
        })
    p.update({
        # Attnblock
        "attn_pw_w": _kaiming(next(ks), (DIM, DIM), DIM),
        "attn_pw_b": jnp.zeros((DIM, 1), jnp.float32),
        "attn_c0_w": _kaiming(next(ks), (3, 3, DIM, 1), 3 * 3),
        "attn_c0_b": jnp.zeros((DIM, 1), jnp.float32),
        "attn_cs_w": _kaiming(next(ks), (7, 7, DIM, 1), 7 * 7),
        "attn_cs_b": jnp.zeros((DIM, 1), jnp.float32),
        "attn_c1_w": _kaiming(next(ks), (DIM, DIM), DIM),
        "attn_c1_b": jnp.zeros((DIM, 1), jnp.float32),
        # mask_extractor (16->1) and proj (16->1), stored as (Cin, 1) columns
        "me_w": _kaiming(next(ks), (DIM, 1), DIM),
        "me_b": jnp.zeros((1, 1), jnp.float32),
        "proj_w": _kaiming(next(ks), (DIM, 1), DIM),
        "proj_b": jnp.zeros((1, 1), jnp.float32),
        # TODO(synk): the torchvision resnet34 regression backbone (self.model) is external to
        # the module source; replaced by a deterministic pooled 2->8 linear head -> (-1, 4, 2).
        "head_w": _kaiming(next(ks), (2, 8), 2),
        "head_b": jnp.zeros((8,), jnp.float32),
    })
    return p


# --------------------------------------------------- pure-JAX reference path ---
def _ref_bn(x, gamma, beta, eps=1e-5):
    mean = jnp.mean(x, axis=(0, 1, 2), keepdims=True)
    var = jnp.mean(jnp.square(x - mean), axis=(0, 1, 2), keepdims=True)
    return (x - mean) * jax.lax.rsqrt(var + eps) * gamma[:, 0] + beta[:, 0]


def _ref_pw(x, wT, b):
    y = jnp.einsum("bhwc,dc->bhwd", x, wT, precision=jax.lax.Precision.HIGHEST)
    return y + b[:, 0]


def _ref_dwconv(x, w, b, k):
    _, H, W, _ = x.shape
    pad = k // 2
    xp = jnp.pad(x, ((0, 0), (pad, pad), (pad, pad), (0, 0)))
    acc = jnp.zeros_like(x)
    for ky in range(k):
        for kx in range(k):
            acc = acc + xp[:, ky:ky + H, kx:kx + W, :] * w[ky, kx, :, 0]
    return acc + b[:, 0]


def reference_forward(params, data):
    """Pure-JAX (non-Pallas) reference of the same forward pass, used only for validation."""
    hp = jax.lax.Precision.HIGHEST
    inputs = jnp.concatenate([data[PATCH_KEYS[0]], data[PATCH_KEYS[1]]], axis=0)
    B2, Cin, Hin, Win = inputs.shape
    Hp, Wp = Hin // PATCH, Win // PATCH
    B = B2 // 2

    patches = (inputs.reshape(B2, Cin, Hp, PATCH, Wp, PATCH)
               .transpose(0, 2, 4, 1, 3, 5)
               .reshape(B2, Hp, Wp, Cin * PATCH * PATCH))
    out = jnp.einsum("bhwk,dk->bhwd", patches, params["pe_w"], precision=hp) + params["pe_b"][:, 0]
    out = _ref_bn(out, params["pe_gamma"], params["pe_beta"])

    for bp in params["blocks"]:
        h = _ref_bn(_ref_dwconv(out, bp["dw_w"], bp["dw_b"], 7), bp["bn_gamma"], bp["bn_beta"])
        h = jax.nn.gelu(_ref_pw(h, bp["pw1_w"], bp["pw1_b"]), approximate=False)
        out = out + _ref_pw(h, bp["pw2_w"], bp["pw2_b"])

    a = _ref_pw(out, params["attn_pw_w"], params["attn_pw_b"])
    attn = _ref_pw(_ref_dwconv(a, params["attn_c0_w"], params["attn_c0_b"], 3)
                   + _ref_dwconv(a, params["attn_cs_w"], params["attn_cs_b"], 7),
                   params["attn_c1_w"], params["attn_c1_b"])

    feature = _ref_pw(out, params["proj_w"].T, params["proj_b"])
    mask = jax.nn.sigmoid(_ref_pw(attn, params["me_w"].T, params["me_b"]))
    fm = feature * mask

    pooled = jnp.stack([jnp.mean(fm[:B, :, :, 0], axis=(1, 2)),
                        jnp.mean(fm[B:, :, :, 0], axis=(1, 2))], axis=1)       # (B, 2)
    o = (jnp.dot(pooled, params["head_w"], precision=hp) + params["head_b"]).reshape(-1, 4, 2)

    feature_nchw = jnp.transpose(feature, (0, 3, 1, 2))
    mask_nchw = jnp.transpose(mask, (0, 3, 1, 2))
    return {MASK_KEYS[0]: mask_nchw[:B], MASK_KEYS[1]: mask_nchw[B:],
            FEATURE_KEYS[0]: feature_nchw[:B], FEATURE_KEYS[1]: feature_nchw[B:],
            TARGET_KEYS[0]: o}


# ------------------------------------------------------------------- main ----
if __name__ == "__main__":
    _resolve_roll_sign()        # probe pltpu.roll's rotation convention eagerly (outside jit)

    key = jax.random.PRNGKey(0)
    k1, k2, kp = jax.random.split(key, 3)

    # Small shapes: 2 patches per stream, 1 channel, 32x32 spatial (patch-embed -> 8x8x16).
    input_1 = jax.random.normal(k1, (2, 1, 32, 32), jnp.float32)
    input_2 = jax.random.normal(k2, (2, 1, 32, 32), jnp.float32)
    params = init_params(kp)
    data = {PATCH_KEYS[0]: input_1, PATCH_KEYS[1]: input_2}

    fwd = jax.jit(model_forward)
    result = jax.block_until_ready(fwd(params, data))

    # shape sanity checks
    assert result[MASK_KEYS[0]].shape == (2, 1, 8, 8)
    assert result[FEATURE_KEYS[0]].shape == (2, 1, 8, 8)
    assert result[TARGET_KEYS[0]].shape == (2, 4, 2)

    # numerical check of the fused Pallas path against the pure-JAX reference
    ref = reference_forward(params, data)
    for kname in (MASK_KEYS[0], MASK_KEYS[1], FEATURE_KEYS[0], FEATURE_KEYS[1], TARGET_KEYS[0]):
        np.testing.assert_allclose(np.asarray(result[kname]), np.asarray(ref[kname]),
                                   rtol=1e-2, atol=1e-2)

    print("KERNEL_OK")
</pallas_src>

<mosaic_0001>
module attributes {stable_mosaic.version = 11 : i64} {
  func.func @_roll_probe_kernel(%arg0: memref<1x256xf32, #tpu.memory_space<vmem>>, %arg1: memref<1x256xf32, #tpu.memory_space<vmem>>) attributes {dimension_semantics = [], scalar_prefetch = 0 : i64, scratch_operands = 0 : i64, tpu.core_type = #tpu.core_type<tc>} {
    %c0 = arith.constant 0 : index
    %c0_0 = arith.constant 0 : index
    %0 = vector.load %arg0[%c0, %c0_0] : memref<1x256xf32, #tpu.memory_space<vmem>>, vector<1x256xf32>
    %c1_i32 = arith.constant 1 : i32
    %1 = tpu.dynamic_rotate %0 by %c1_i32 dim 1 : vector<1x256xf32>, i32 -> vector<1x256xf32>
    %c0_1 = arith.constant 0 : index
    %c0_2 = arith.constant 0 : index
    %2 = vector.load %arg1[%c0_1, %c0_2] : memref<1x256xf32, #tpu.memory_space<vmem>>, vector<1x256xf32>
    tpu.vector_store %arg1[%c0_1, %c0_2], %1 {strides = array<i32>} : memref<1x256xf32, #tpu.memory_space<vmem>>, vector<1x256xf32>,
    return
  }
}

</mosaic_0001>

<bundles_post_ra>
// kernel: tpu_custom_call.1
= control target key start
LH: loop header
LB: loop body
LE: loop exit
PB: predicated region body
PF: predicated region fallthrough
CT: control target
= control target key end

     0   :  { %6 = vsyncpa [#allocation3], 0  ;;  %s170_s0 = inlined_call_operand.hbm [shape: f32[1,256], index: 0, kind: input, shape index: {}]   ;;  %s171_s1 = inlined_call_operand.hbm [shape: f32[1,256], index: 1, kind: output, shape index: {}]  }
   0x1   :  { %7 = vsyncpa [#allocation4], 0  ;;  %s132_s6 = smov [#allocation2]   ;;  %s84_s10 = scalar_lea.hbm %s170_s0, 32 }
   0x2   :  { %s14_s7 = sshll.u32 %s132_s6, 4  ;;  %p85_p0 = scmp.ne.s32.totalorder %s170_s0, %s84_s10  ;;  %s15_s7 = int_to_ptr.vmem [resolvable:$true] %s14_s7 }
   0x3   :  { %p88_p1 = scmp.lt.u32.totalorder %s84_s10, %s170_s0 }
   0x5   :  { %p90_p2 = pnand %p88_p1, %p85_p0 }
   0x7   :  { %93 = shalt.err (!%p90_p2)
}
   0x8   :  { %s94_s15 = scalar_lea.vmem %s15_s7, 32  ;;  %p99_p4 = scmp.lt.s32.totalorder %s15_s7, %s15_s7 }
   0x9   :  { %p95_p3 = scmp.ne.s32.totalorder %s15_s7, %s94_s15  ;;  %p100_p5 = scmp.lt.s32.totalorder %s94_s15, %s94_s15 }
   0xb   :  { %p101_p6 = por %p100_p5, %p99_p4 }
   0xd   :  { %p102_p7 = pnand %p101_p6, %p95_p3 }
   0xf   :  { %105 = shalt.err (!%p102_p7)
}
  0x10   :  { %17 = dma.hbm_to_vmem [thread:$0]  %s170_s0, 32, %s15_s7, [#allocation3]  }
  0x11   :  { %128 = dma.done.wait [#allocation3], 32  }
  0x12   :  { %129 = vsyncadd [#allocation3], 4294967264  ;;  %v23_v0 = vlaneseq  ;;  %v21_v4 = vld [vmem:[#allocation2] sm:$0x3]  ;;  %s133_s18 = smov 1   ;;  %s135_s0 = smov [#allocation5]  }
  0x13   :  { %v134_v7 = vmov 1966171168   ;;  %s71_s19 = sshll.u32 %s135_s0, 4  ;;  %s72_s19 = int_to_ptr.vmem [resolvable:$true] %s71_s19 }
  0x14   :  { %v24_v1 = vshrl.u32 %v23_v0, 7  ;;  %v46_v8 = vunpack.c.l.s4 %v134_v7  ;;  %v38_v9 = vand.u32 127, %v23_v0  ;;  %vm62_vm1 = vcmp.lt.s32.totalorder %v23_v0, 256  ;;  %s106_s20 = scalar_lea.vmem %s72_s19, 32  ;;  %p111_p9 = scmp.lt.s32.totalorder %s72_s19, %s72_s19 }
  0x15   :  { %p107_p8 = scmp.ne.s32.totalorder %s72_s19, %s106_s20  ;;  %p112_p10 = scmp.lt.s32.totalorder %s106_s20, %s106_s20 }
  0x16   :  { %v25_v2 = vsub.s32 0, %v24_v1  ;;  %v29_v3 = vsub.s32 1, %v24_v1  ;;  %v47_v11 = vunpack.c.0.s8 %v46_v8  ;;  %vm39_vm0 = vcmp.lt.s32.totalorder %v38_v9, 1 }
  0x17   :  { %p113_p11 = por %p112_p10, %p111_p9 }
  0x18   :  { %v26_v5 = vrot.slane %v21_v4, %v25_v2  ;;  %v30_v6 = vrot.slane %v21_v4, %v29_v3  ;;  %v50_v12 = vsub.s32 %v47_v11, %v24_v1 }
  0x19   :  { %p114_p12 = pnand %p113_p11, %p107_p8 }
  0x1a   :  { %33 = vrot.lane.b32.xlu0 %v26_v5, %s133_s18 }
  0x1e   :  { %35 = vrot.lane.b32.xlu0 %v30_v6, %s133_s18 }
  0x8c   :  { %v34_v10 = vpop.permute.xlu0 %33 }
  0x90   :  { %v36_v13 = vpop.permute.xlu0 %35 }
  0x91   :  { %v40_v14 = vsel %vm39_vm0, %v34_v10, %v36_v13  ;;  %v41_v15 = vsel %vm39_vm0, %v36_v13, %v34_v10 }
  0x92   :  { %v44_v16 = vcombine.low %v41_v15, %v40_v14 }
  0x94   :  { %v51_v17 = vrot.slane %v44_v16, %v50_v12 }
  0x96   :  { %v58_v18 = vrot.slane %v51_v17, %v50_v12 }
  0x98   :  { %64 = vst.msk [vmem:[#allocation5] sm:$0x3] %vm62_vm1, %v58_v18 }
  0x99   :  { %117 = shalt.err (!%p114_p12)
}
  0x9a   :  { %s118_s23 = scalar_lea.hbm %s171_s1, 32 }
  0x9b   :  { %p119_p13 = scmp.ne.s32.totalorder %s171_s1, %s118_s23  ;;  %p122_p0 = scmp.lt.u32.totalorder %s118_s23, %s171_s1 }
  0x9d   :  { %p124_p1 = pnand %p122_p0, %p119_p13 }
  0x9f   :  { %127 = shalt.err (!%p124_p1)
}
  0xa0   :  { %74 = dma.vmem_to_hbm [thread:$0]  %s72_s19, 32, %s171_s1, [#allocation4]  }
  0xa1   :  { %130 = dma.done.wait [#allocation4], 32  }
  0xa2   :  { %131 = vsyncadd [#allocation4], 4294967264 }
  0xa3   :  { %78 = vsyncpa [#allocation3], 1 }
  0xa4   :  { %79 = vsyncpa [#allocation4], 1 }

</bundles_post_ra>
